<compile_context>
chip_gen: v6e
topology: v6e:2x2x1
jax: 0.10.0
libtpu: 0.0.40
codegen_flags: <defaults>
</compile_context>

<pallas_src>
import math

import jax
import jax.numpy as jnp
from jax.experimental import pallas as pl
from jax.experimental.pallas import tpu as pltpu


def _bias_kernel(x_ref, b_ref, o_ref):
    # x_ref: (TILE_N, TILE_F) VMEM tile; b_ref: (1, TILE_F) resident bias row.
    # (1, TILE_F) broadcasts across the sublane (row) dimension.
    o_ref[...] = x_ref[...] + b_ref[...]


def _sublane_packing(dtype) -> int:
    # Sub-32-bit dtypes pack along sublanes: f32 -> 8, bf16 -> 16, int8/fp8 -> 32.
    return {4: 8, 2: 16, 1: 32}.get(jnp.dtype(dtype).itemsize, 8)


def _vmem_capacity_bytes() -> int:
    # Generation-aware VMEM capacity; be conservative (v7x = 64 MiB) on failure.
    try:
        info = pltpu.get_tpu_info()
        cap = int(getattr(info, "vmem_capacity_bytes"))
        if cap > 0:
            return cap
    except Exception:
        pass
    return 64 << 20


def bias_forward(x, bias, *, donate_x=False):
    """y = x + bias.  x: [N, F], bias: [F]."""
    N, F = x.shape
    assert bias.shape == (F,), f"bias shape {bias.shape} != ({F},)"

    # PyTorch-style promotion: bf16 x + f32 bias -> f32 result.
    out_dtype = jnp.result_type(x.dtype, bias.dtype)
    itemsize = jnp.dtype(out_dtype).itemsize
    pack = _sublane_packing(out_dtype)

    xw = x.astype(out_dtype)
    bw = bias.astype(out_dtype)

    # ---- Lane-dense repack when F is not a multiple of 128 ----------------
    # [N, F] -> [N/g, g*F] with g = lcm(F,128)/F: pure reshape (rows are
    # contiguous), bias tiled g times. Makes the last dim a multiple of 128 so
    # all stores are unmasked.
    repack_g = 1
    if F % 128 != 0:
        g = (F * 128 // math.gcd(F, 128)) // F  # lcm(F, 128) / F
        if g > 1 and N % g == 0:
            repack_g = g
            xw = xw.reshape(N // g, g * F)
            bw = jnp.tile(bw, g)
    Nr, Fr = xw.shape

    # ---- Generation-aware tile budget / VMEM ceiling -----------------------
    vmem_cap = _vmem_capacity_bytes()
    if vmem_cap >= (96 << 20):          # v5e / v6e: 128 MiB physical VMEM
        target_tile_bytes = 8 << 20
        vmem_ceiling = 96 << 20
    else:                               # v7x: 64 MiB VMEM per TensorCore
        target_tile_bytes = 6 << 20
        vmem_ceiling = 48 << 20

    # ---- Feature (lane) tiling ---------------------------------------------
    # Keep the full row (lane-dense) unless Fr is a very wide multiple of 128.
    MAX_TILE_F = 16384
    if Fr % 128 == 0 and Fr > MAX_TILE_F:
        tile_f = MAX_TILE_F
    else:
        tile_f = Fr  # must equal full dim when Fr is not 128-aligned

    # Safety: F not 128-aligned, not repackable, and so wide that even a
    # pack-row tile blows the VMEM budget -> pad F to a 128 multiple so the
    # feature axis can be tiled; output is sliced back afterwards.
    f_padded = False
    if tile_f == Fr and Fr % 128 != 0:
        min_tile_bytes = pack * Fr * itemsize
        if 4 * min_tile_bytes > vmem_ceiling - (4 << 20):
            Fp = ((Fr + 127) // 128) * 128
            xw = jnp.pad(xw, ((0, 0), (0, Fp - Fr)))
            bw = jnp.pad(bw, (0, Fp - Fr))
            Fr = Fp
            f_padded = True
            tile_f = min(Fr, MAX_TILE_F)

    # ---- Row (sublane) tiling from the VMEM budget -------------------------
    tile_n = max(pack, target_tile_bytes // (tile_f * itemsize))
    tile_n = (tile_n // pack) * pack                     # multiple of packing
    n_rounded = ((Nr + pack - 1) // pack) * pack
    # Guarantee >= 2 row tiles when possible so both v7x TensorCores get work.
    if n_rounded > pack:
        half_rows = -(-Nr // 2)
        half_rows = ((half_rows + pack - 1) // pack) * pack
        tile_n = min(tile_n, half_rows)
    tile_n = max(pack, min(tile_n, n_rounded))           # don't exceed data

    grid = (pl.cdiv(Nr, tile_n), pl.cdiv(Fr, tile_f))

    # ---- VMEM limit: 2x(x tile) + 2x(out tile) + bias + slack --------------
    vmem_needed = (4 * tile_n * tile_f + 2 * tile_f) * itemsize + (2 << 20)
    vmem_limit = int(min(max(vmem_needed, 32 << 20), vmem_ceiling))

    b2d = bw.reshape(1, Fr)

    extra_kwargs = {}
    if donate_x:
        # y aliases x's HBM buffer (input 0 -> output 0); saves footprint, not
        # traffic. Only effective if the caller actually donates x at jit.
        extra_kwargs["input_output_aliases"] = {0: 0}

    y = pl.pallas_call(
        _bias_kernel,
        out_shape=jax.ShapeDtypeStruct((Nr, Fr), out_dtype),
        grid=grid,
        in_specs=[
            pl.BlockSpec((tile_n, tile_f), lambda i, j: (i, j)),
            pl.BlockSpec((1, tile_f), lambda i, j: (0, j)),
        ],
        out_specs=pl.BlockSpec((tile_n, tile_f), lambda i, j: (i, j)),
        compiler_params=pltpu.CompilerParams(
            dimension_semantics=("parallel", "parallel"),
            vmem_limit_bytes=vmem_limit,
        ),
        cost_estimate=pl.CostEstimate(
            flops=Nr * Fr,
            transcendentals=0,
            bytes_accessed=(2 * Nr * Fr + Fr) * itemsize,
        ),
        **extra_kwargs,
    )(xw, b2d)

    if f_padded:
        y = y[:, :F]
    if repack_g > 1:
        y = y.reshape(N, F)
    return y


if __name__ == "__main__":
    key = jax.random.PRNGKey(0)

    # Small shapes consistent with the module: x [N, size], bias [size].
    N, size = 16, 128
    x = jax.random.normal(key, (N, size), dtype=jnp.float32)

    # Deterministic parameter init matching reset_parameters(): zeros.
    bias = jnp.zeros((size,), dtype=jnp.float32)

    y = bias_forward(x, bias)
    jax.block_until_ready(y)
    assert y.shape == (N, size)
    assert jnp.allclose(y, x + bias), "mismatch with reference (zero bias)"

    # Nonzero bias.
    bias2 = jnp.arange(size, dtype=jnp.float32) * 0.01
    y2 = bias_forward(x, bias2)
    jax.block_until_ready(y2)
    assert jnp.allclose(y2, x + bias2[None, :], atol=1e-6), "mismatch (nonzero bias)"

    # Ragged rows + non-128 feature width -> lane-dense repack path
    # (g = lcm(96,128)/96 = 4; 300 % 4 == 0 so reshape, no copy).
    k2 = jax.random.PRNGKey(1)
    x3 = jax.random.normal(k2, (300, 96), dtype=jnp.float32)
    bias3 = jax.random.normal(jax.random.PRNGKey(2), (96,), dtype=jnp.float32)
    y3 = bias_forward(x3, bias3)
    jax.block_until_ready(y3)
    assert y3.shape == (300, 96)
    assert jnp.allclose(y3, x3 + bias3[None, :], atol=1e-6), "mismatch (ragged case)"

    # Mixed dtype: bf16 activations + f32 bias -> f32 output (PyTorch promotion).
    x4 = jax.random.normal(jax.random.PRNGKey(3), (16, 128), dtype=jnp.bfloat16)
    y4 = bias_forward(x4, bias2)
    jax.block_until_ready(y4)
    assert y4.dtype == jnp.float32
    assert jnp.allclose(y4, x4.astype(jnp.float32) + bias2[None, :], atol=1e-6), \
        "mismatch (mixed dtype promotion)"

    print("KERNEL_OK")
</pallas_src>

<mosaic_0001>
module attributes {stable_mosaic.version = 11 : i64} {
  func.func @_bias_kernel(%arg0: i32, %arg1: i32, %arg2: memref<8x128xf32, #tpu.memory_space<vmem>>, %arg3: memref<1x128xf32, #tpu.memory_space<vmem>>, %arg4: memref<8x128xf32, #tpu.memory_space<vmem>>) attributes {dimension_semantics = [#tpu.dimension_semantics<parallel>, #tpu.dimension_semantics<parallel>], iteration_bounds = array<i64: 2, 1>, scalar_prefetch = 0 : i64, scratch_operands = 0 : i64, tpu.core_type = #tpu.core_type<tc>, window_params = [{transform_indices = @transform_0, window_bounds = array<i64: 8, 128>}, {transform_indices = @transform_1, window_bounds = array<i64: 1, 128>}, {transform_indices = @transform_2, window_bounds = array<i64: 8, 128>}]} {
    %c0 = arith.constant 0 : index
    %c0_0 = arith.constant 0 : index
    %0 = vector.load %arg2[%c0, %c0_0] : memref<8x128xf32, #tpu.memory_space<vmem>>, vector<8x128xf32>
    %c0_1 = arith.constant 0 : index
    %c0_2 = arith.constant 0 : index
    %1 = vector.load %arg3[%c0_1, %c0_2] : memref<1x128xf32, #tpu.memory_space<vmem>>, vector<1x128xf32>
    %2 = vector.broadcast %1 : vector<1x128xf32> to vector<8x128xf32>
    %3 = arith.addf %0, %2 : vector<8x128xf32>
    %c0_3 = arith.constant 0 : index
    %c0_4 = arith.constant 0 : index
    %4 = vector.load %arg4[%c0_3, %c0_4] : memref<8x128xf32, #tpu.memory_space<vmem>>, vector<8x128xf32>
    tpu.vector_store %arg4[%c0_3, %c0_4], %3 {strides = array<i32>} : memref<8x128xf32, #tpu.memory_space<vmem>>, vector<8x128xf32>,
    return
  }
  func.func @transform_0(%arg0: i32, %arg1: i32) -> (i32, i32) {
    %c0_i32 = arith.constant 0 : i32
    return %arg0, %arg1 : i32, i32
  }
  func.func @transform_1(%arg0: i32, %arg1: i32) -> (i32, i32) {
    %c0_i32 = arith.constant 0 : i32
    %c0_i32_0 = arith.constant 0 : i32
    return %c0_i32, %arg1 : i32, i32
  }
  func.func @transform_2(%arg0: i32, %arg1: i32) -> (i32, i32) {
    %c0_i32 = arith.constant 0 : i32
    return %arg0, %arg1 : i32, i32
  }
}

</mosaic_0001>

<bundles_post_ra>
// kernel: tpu_custom_call.1
= control target key start
LH: loop header
LB: loop body
LE: loop exit
PB: predicated region body
PF: predicated region fallthrough
CT: control target
= control target key end

     0   :  { %7 = vsyncpa [#allocation3], 0  ;;  %s648_s0 = inlined_call_operand.hbm [shape: f32[16,128], index: 0, kind: input, shape index: {}]   ;;  %s649_s1 = inlined_call_operand.vmem [shape: f32[1,128], index: 1, kind: input, shape index: {}]   ;;  %s650_s2 = inlined_call_operand.hbm [shape: f32[16,128], index: 2, kind: output, shape index: {}]  }
   0x1   :  { %9 = vsyncpa [#allocation3 + $0x1], 0 }
   0x2   :  { %10 = vsyncpa [#allocation4], 0 }
   0x3   :  { %12 = vsyncpa [#allocation4 + $0x1], 0  ;;  %s511_s9 = smov 0   ;;  %s513_s10 = smov 0  }
   0x4   :  { %s515_s11 = smov 0   ;;  %s517_s12 = smov 0  }
   0x5   :  { %s519_s13 = smov 0   ;;  %s521_s14 = smov 0  }
   0x6 LB: > { %s307_s15 = sadd.s32 4294967295, %s492_s14   ;;  %s308_s16 = sadd.s32 4294967294, %s492_s14   ;;  %s492_s14 = sphi %s521_s14, %s18_s14   ;;  %s488_s13 = sphi %s519_s13, %s662_s13   ;;  %s484_s12 = sphi %s517_s12, %s661_s12   ;;  %s480_s11 = sphi %s515_s11, %s660_s11   ;;  %s476_s10 = sphi %s513_s10, %s659_s10   ;;  %s472_s9 = sphi %s511_s9, %s658_s9  }
   0x7   : > { %s30_s17 = sadd.s32 1, %s488_s13  ;;  %s39_s18 = sadd.s32 1, %s480_s11 }
   0x8   : > { %p32_p0 = scmp.ge.s32.totalorder %s30_s17, 2  ;;  %p46_p1 = scmp.ne.s32.totalorder %s480_s11, %s476_s10 }
   0x9   : > { %p47_p2 = scmp.eq.s32.totalorder %s492_s14, 0  ;;  %p52_p3 = scmp.ne.s32.totalorder %s476_s10, %s472_s9 }
   0xa   : > { %s664_s17 = smov (%p32_p0, %s30_s17), 0  ;;  %p53_p5 = scmp.eq.s32.totalorder %s307_s15, 0 }
   0xb   : > { %p552_p4 = por %p47_p2, %p46_p1  ;;  %s34_s20 = ssub.s32 %s488_s13, %s664_s17 }
   0xc   : > { %p104_p6 = scmp.eq.s32.totalorder %s307_s15, 1  ;;  %p37_p7 = scmp.eq.s32.totalorder %s34_s20, 0 }
   0xd   : > { %p558_p8 = por %p53_p5, %p52_p3  ;;  %p110_p10 = scmp.eq.s32.totalorder %s308_s16, 1 }
   0xe   : > { %p562_p9 = por %p104_p6, %p46_p1  ;;  %p334_p13 = scmp.lt.s32.totalorder %s492_s14, 2 }
   0xf   : > { %s567_s23 = scalar_select %p37_p7, %s480_s11, %s39_s18  }
  0x10   : > { %p569_p11 = por %p110_p10, %p52_p3  ;;  %s136_s25 = sand.u32 1, %s480_s11  }
  0x11   : > { %s312_s26 = sshll.u32 %s136_s25, 3  ;;  %s313_s27 = sshll.u32 %s488_s13, 7 }
  0x12   : > { %s654_s24 = scalar_select %p569_p11, 1, 0 }
  0x13   : > { %s146_s30 = scalar_lea.hbm %s648_s0, %s313_s27  ;;  %s140_s3 = scalar_lea.vmem [#allocation2], %s312_s26 }
  0x14   : > { %s148_s4 = sshll.u32 %s140_s3, 4  ;;  %p582_p0 = pnand %p334_p13, %p552_p4  ;;  %s149_s4 = int_to_ptr.vmem [resolvable:$true] %s148_s4 }
  0x15   : > { %p314_p1 = scmp.ge.s32.totalorder %s492_s14, 1  ;;  %p153_p2 = scmp.lt.s32.totalorder %s492_s14, 3 }
  0x16   : > { %s137_s6 = scalar_lea.sflag [#allocation3], %s136_s25  ;;  %p386_p3 = pneg %p582_p0 }
  0x17   : > { %s397_s7 = scalar_lea.vmem %s149_s4, 128  ;;  %s494_s8 = smov [#allocation2]  }
  0x18   : > { %p398_p5 = scmp.ne.s32.totalorder %s149_s4, %s397_s7  ;;  %s402_s15 = sshll.u32 %s494_s8, 4  ;;  %s403_s15 = int_to_ptr.vmem [resolvable:$false] %s402_s15 }
  0x19   : > { %s404_s16 = scalar_lea.vmem %s403_s15, 256  ;;  %p405_p10 = scmp.lt.s32.totalorder %s149_s4, %s403_s15 }
  0x1a   : > { %p400_p6 = pnand %p398_p5, %p386_p3  ;;  %p406_p12 = scmp.lt.s32.totalorder %s404_s16, %s397_s7 }
  0x1c   : > { %p401_p7 = pneg %p400_p6  ;;  %p407_p4 = por %p406_p12, %p405_p10 }
  0x1e   : > { %p408_p13 = pnand %p407_p4, %p401_p7 }
  0x20   : > { %411 = shalt.err (!%p408_p13)
}
  0x21   : > { %329 = dma.hbm_to_vmem [thread:$0]  (!%p582_p0), %s146_s30, 128, %s149_s4, %s137_s6  }
  0x22   : > { %p154_p11 = pnand %p314_p1, %p153_p2 }
  0x23   : > { %s597_s18 = sand.u32 (!%p154_p11), 1, %s476_s10  }
  0x24   : > { %157 = sbr.rel (%p154_p11) target bundleno = 66 (0x42), region = 28  ;;  %s315_s19 = sshll.u32 (!%p154_p11), %s597_s18, 3 }
  0x25   : > { %s160_s20 = scalar_lea.sflag (!%p154_p11), [#allocation3], %s597_s18  ;;  %s163_s25 = scalar_lea.vmem (!%p154_p11), [#allocation2], %s315_s19 }
  0x29   : > { %463 = dma.done.wait (%p558_p8), %s160_s20, 128  }
  0x2a   : > { %465 = vsyncadd (%p558_p8), %s160_s20, 4294967168  ;;  %s186_s26 = scalar_lea.vmem [#allocation5], %s315_s19  ;;  %s319_s28 = sshll.u32 %s484_s12, 7  ;;  %v190_v0 = vld [vmem:[%s163_s25] sm:$0xff] }
  0x2b   : > { %s215_s27 = sshll.u32 %s186_s26, 4  ;;  %v317_v1 = vld [vmem:[%s649_s1] ss:$0 sm:$0xff]  ;;  %s213_s5 = scalar_lea.hbm %s650_s2, %s319_s28  ;;  %s216_s27 = int_to_ptr.vmem [resolvable:$true] %s215_s27 }
  0x2c   : > { %v198_v2 = vadd.f32 %v317_v1, %v190_v0  ;;  %s201_s21 = scalar_lea.sflag [#allocation4], %s597_s18  ;;  %s412_s6 = scalar_lea.vmem %s216_s27, 128 }
  0x2d   : > { %p413_p8 = scmp.ne.s32.totalorder %s216_s27, %s412_s6  ;;  %s495_s7 = smov [#allocation5]  }
  0x2e   : > { %199 = vst [vmem:[%s186_s26] sm:$0xff] %v198_v2  ;;  %s416_s12 = sshll.u32 %s495_s7, 4  ;;  %s417_s12 = int_to_ptr.vmem [resolvable:$false] %s416_s12 }
  0x2f   : > { %p414_p11 = pnand %p413_p8, %p562_p9  ;;  %s418_s8 = scalar_lea.vmem %s417_s12, 256 }
  0x30   : > { %p419_p0 = scmp.lt.s32.totalorder %s216_s27, %s417_s12  ;;  %p420_p1 = scmp.lt.s32.totalorder %s418_s8, %s412_s6 }
  0x31   : > { %p415_p12 = pneg %p414_p11 }
  0x32   : > { %p421_p2 = por %p420_p1, %p419_p0 }
  0x34   : > { %p422_p3 = pnand %p421_p2, %p415_p12 }
  0x36   : > { %425 = shalt.err (!%p422_p3)
}
  0x37   : > { %s426_s15 = scalar_lea.hbm %s213_s5, 128  ;;  %s430_s19 = scalar_lea.hbm %s650_s2, 256 }
  0x38   : > { %p427_p5 = scmp.ne.s32.totalorder %s213_s5, %s426_s15  ;;  %p431_p10 = scmp.lt.s32.totalorder %s213_s5, %s650_s2 }
  0x39   : > { %p432_p4 = scmp.lt.s32.totalorder %s430_s19, %s426_s15 }
  0x3a   : > { %p428_p6 = pnand %p427_p5, %p562_p9 }
  0x3b   : > { %p433_p13 = por %p432_p4, %p431_p10 }
  0x3c   : > { %p429_p7 = pneg %p428_p6 }
  0x3e   : > { %p434_p8 = pnand %p433_p13, %p429_p7 }
  0x40   : > { %437 = shalt.err (!%p434_p8)
}
  0x41   : > { %324 = dma.vmem_to_hbm [thread:$0]  (%p562_p9), %s216_s27, 128, %s213_s5, %s201_s21  }
  0x42 PF: > { %s227_s26 = sand.u32 1, %s472_s9   ;;  %p656_p11 = scmp.ne.s32.totalorder %s654_s24, 0 }
  0x43   : > { %p657_p12 = scmp.ge.s32.totalorder %s492_s14, 2  ;;  %s228_s28 = scalar_lea.sflag [#allocation4], %s227_s26 }
  0x45   : > { %p331_p0 = pnand %p657_p12, %p656_p11 }
  0x47   : > { %p332_p1 = pneg %p331_p0 }
  0x49   : > { %467 = dma.done.wait (%p332_p1), %s228_s28, 128  }
  0x4a   : > { %469 = vsyncadd (%p332_p1), %s228_s28, 4294967168  ;;  %s18_s14 = sadd.s32 1, %s492_s14   ;;  %s658_s9 = smov %s476_s10 }
  0x4b   : > { %p15_p2 = scmp.ge.s32.totalorder %s18_s14, 4   ;;  %s659_s10 = smov %s480_s11 }
  0x4c   : > { %s660_s11 = smov %s567_s23  ;;  %s661_s12 = smov %s488_s13 }
  0x4d   : > { %s662_s13 = smov %s664_s17  ;;  %17 = sbr.rel (!%p15_p2) target bundleno = 6 (0x6), region = 76 }
  0x52   :  { %233 = vsyncpa [#allocation3], 1 }
  0x53   :  { %235 = vsyncpa [#allocation3 + $0x1], 1 }
  0x54   :  { %236 = vsyncpa [#allocation4], 1 }
  0x55   :  { %238 = vsyncpa [#allocation4 + $0x1], 1 }

</bundles_post_ra>
